<compile_context>
chip_gen: v6e
topology: v6e:2x2x1
jax: 0.10.0
libtpu: 0.0.40
codegen_flags: <defaults>
</compile_context>

<pallas_src>
import functools

import jax
import jax.numpy as jnp
from jax.experimental import pallas as pl
from jax.experimental.pallas import tpu as pltpu


def _round_up(x, m):
    return (x + m - 1) // m * m


def _conv_bn_relu_pool_kernel(slabs_ref, w_ref, shift_ref, o_ref, *,
                              k, pool_w, cin_pad, wpool, lout, cout):
    """One image per grid step: shifted-matmul conv + folded-BN shift + ReLU + W max-pool.

    slabs_ref : (1, (pool_w+k-1)*cin_pad, Hp*wpool) bf16  decimated padded-input slabs
    w_ref     : (k, cout_pad, k*cin_pad) bf16             conv weights, BN scale pre-folded,
                                                          columns ordered (kw, ci)
    shift_ref : (cout_pad, 1) f32                         folded BN/bias shift
    o_ref     : (1, cout, lout) f32                       pooled output, lout = Ho*wpool
    """
    slab = slabs_ref[0]                              # (n_slabs*cin_pad, Hp*wpool)
    cout_pad = w_ref.shape[1]
    pooled = None
    for p in range(pool_w):                          # static, tiny (pool offsets)
        acc = jnp.zeros((cout_pad, lout), jnp.float32)
        for kh in range(k):                          # static: K shifted MXU matmuls
            # rows p*cin_pad:(p+k)*cin_pad = slabs {p..p+k-1} -> padded cols pool_w*m+p+kw
            # lanes kh*wpool: ... = padded row ho+kh at pooled-column position m
            rhs = slab[p * cin_pad:(p + k) * cin_pad,
                       kh * wpool: kh * wpool + lout]
            acc = acc + jnp.dot(w_ref[kh], rhs, preferred_element_type=jnp.float32)
        # max-pool along W: monotone ops commute with +shift/ReLU, so pool pre-activation
        pooled = acc if p == 0 else jnp.maximum(pooled, acc)
    y = jnp.maximum(pooled + shift_ref[...], 0.0)
    o_ref[0] = y[:cout].astype(o_ref.dtype)


def conv_layer_forward(x_nchw, weight, bias, gamma, beta, run_mean, run_var,
                       *, padding=1, pool_size=(1, 2), eps=1e-5,
                       matmul_dtype=jnp.bfloat16):
    N, Cin, H, W = x_nchw.shape
    Cout, _, K, _ = weight.shape
    ph, pw = pool_size
    assert ph == 1  # TODO(synk): pool_h > 1 never occurs in this module's configs

    Hp, Wp = H + 2 * padding, W + 2 * padding
    Ho, Wo = Hp - K + 1, Wp - K + 1
    Wpool = Wo // pw                                  # MaxPool2d floor behaviour
    Lout = Ho * Wpool                                 # 128 here -> unmasked lane-dense stores
    S = Hp * Wpool
    n_slabs = pw + K - 1
    Cin_pad = _round_up(Cin, 8)
    Cout_pad = _round_up(Cout, 16)                    # bf16 packed-sublane friendly

    # ---- decimated input slabs (cheap: ~1-2x input bytes, fuses into one XLA pass) ----
    # slab v [n, ci, h, m] = xpad[n, ci, h, pw*m + v]; inside the kernel, pool offset p
    # with conv tap kw reads slab p+kw at the SAME lane position -> conv output lands
    # directly on the pooled-column grid (no in-kernel gather or compaction).
    xp = jnp.pad(x_nchw, ((0, 0), (0, 0), (padding, padding), (padding, padding)))
    slabs = jnp.stack([xp[..., v: v + pw * Wpool: pw] for v in range(n_slabs)], axis=1)
    slabs = jnp.pad(slabs, ((0, 0), (0, 0), (0, Cin_pad - Cin), (0, 0), (0, 0)))
    slabs = slabs.reshape(N, n_slabs * Cin_pad, S).astype(matmul_dtype)   # free reshapes

    # ---- fold conv bias + BatchNorm (running stats) into weights / shift ----
    scale = gamma / jnp.sqrt(run_var + eps)                               # (Cout,)
    shift = beta + (bias - run_mean) * scale
    shift = jnp.pad(shift, (0, Cout_pad - Cout)).reshape(Cout_pad, 1).astype(jnp.float32)
    w = weight * scale[:, None, None, None]                               # BN scale folded
    wk = jnp.transpose(w, (2, 0, 3, 1))                                   # (kh, Cout, kw, Cin)
    wk = jnp.pad(wk, ((0, 0), (0, Cout_pad - Cout), (0, 0), (0, Cin_pad - Cin)))
    wk = wk.reshape(K, Cout_pad, K * Cin_pad).astype(matmul_dtype)

    # ---- VMEM budget guard (double-buffered IO blocks + accumulators) ----
    vmem_est = (2 * n_slabs * Cin_pad * S * 2          # slab block, double-buffered bf16
                + K * Cout_pad * K * Cin_pad * 2       # weights
                + Cout_pad * 4                          # shift
                + 2 * Cout * Lout * 4                   # output block, double-buffered
                + (pw + 1) * Cout_pad * Lout * 4)       # live f32 accumulators
    assert vmem_est < 30 * 1024 * 1024, vmem_est
    # TODO(synk): for scaled-up configs, split the Lout axis into lane blocks (and grid
    #             over it) to stay under v7x's 64 MiB per-TC VMEM.

    flops = 2 * N * Cout * K * K * Cin * Ho * Wo
    bytes_accessed = (slabs.size * 2 + wk.size * 2 + shift.size * 4 + N * Cout * Lout * 4)

    kernel = functools.partial(_conv_bn_relu_pool_kernel, k=K, pool_w=pw,
                               cin_pad=Cin_pad, wpool=Wpool, lout=Lout, cout=Cout)
    out = pl.pallas_call(
        kernel,
        out_shape=jax.ShapeDtypeStruct((N, Cout, Lout), jnp.float32),
        grid_spec=pltpu.PrefetchScalarGridSpec(
            num_scalar_prefetch=0,
            grid=(N,),                                 # >=2 parallel steps (v7x dual-TC, pipelining)
            in_specs=[
                pl.BlockSpec((1, n_slabs * Cin_pad, S), lambda n: (n, 0, 0)),
                pl.BlockSpec((K, Cout_pad, K * Cin_pad), lambda n: (0, 0, 0)),
                pl.BlockSpec((Cout_pad, 1), lambda n: (0, 0)),
            ],
            out_specs=pl.BlockSpec((1, Cout, Lout), lambda n: (n, 0, 0)),
        ),
        compiler_params=pltpu.CompilerParams(
            dimension_semantics=("parallel",)),
        cost_estimate=pl.CostEstimate(flops=flops, transcendentals=0,
                                      bytes_accessed=bytes_accessed),
    )(slabs, wk, shift)

    out = out.reshape(N, Cout, Ho, Wpool)              # free last-dim split, already NCHW
    # Dropout: identity in eval mode.
    return out


def _reference(x, weight, bias, gamma, beta, run_mean, run_var,
               *, padding, pool_size, eps, matmul_dtype):
    """Plain-XLA reference with the same BN folding + bf16 input quantization."""
    N, Cin, H, W = x.shape
    Cout = weight.shape[0]
    scale = gamma / jnp.sqrt(run_var + eps)
    shift = beta + (bias - run_mean) * scale
    wq = (weight * scale.reshape(Cout, 1, 1, 1)).astype(matmul_dtype).astype(jnp.float32)
    xq = x.astype(matmul_dtype).astype(jnp.float32)
    y = jax.lax.conv_general_dilated(
        xq, wq, window_strides=(1, 1), padding=[(padding, padding)] * 2,
        dimension_numbers=("NCHW", "OIHW", "NCHW"),
        precision=jax.lax.Precision.HIGHEST)
    y = jnp.maximum(y + shift.reshape(1, Cout, 1, 1), 0.0)
    ph, pw = pool_size
    Ho, Wo = y.shape[2], y.shape[3]
    Hp, Wpp = Ho // ph, Wo // pw
    y = y[:, :, :Hp * ph, :Wpp * pw].reshape(N, Cout, Hp, ph, Wpp, pw)
    return y.max(axis=(3, 5))


if __name__ == "__main__":
    key = jax.random.PRNGKey(0)
    k_x, k_w, k_b = jax.random.split(key, 3)

    # ConvLayer(channels=[4, 8], kernel_size=3, pool_size=[1, 2], padding=1)
    N, Cin, H, W = 2, 4, 16, 16
    Cout, K = 8, 3
    eps = 1e-5
    pool = (1, 2)

    x = jax.random.normal(k_x, (N, Cin, H, W), jnp.float32)
    weight = jax.random.normal(k_w, (Cout, Cin, K, K), jnp.float32) * 0.1
    bias = jax.random.normal(k_b, (Cout,), jnp.float32) * 0.1
    gamma = jnp.ones((Cout,), jnp.float32)
    beta = jnp.zeros((Cout,), jnp.float32)
    run_mean = jnp.zeros((Cout,), jnp.float32)
    run_var = jnp.ones((Cout,), jnp.float32)

    out = conv_layer_forward(x, weight, bias, gamma, beta, run_mean, run_var,
                             padding=1, pool_size=pool, eps=eps)
    out = jax.block_until_ready(out)

    ref = _reference(x, weight, bias, gamma, beta, run_mean, run_var,
                     padding=1, pool_size=pool, eps=eps, matmul_dtype=jnp.bfloat16)

    assert out.shape == (N, Cout, H, W // 2), out.shape
    err = float(jnp.max(jnp.abs(out - ref)))
    assert err < 1e-4, err
    print("KERNEL_OK")
</pallas_src>

<mosaic_0001>
module attributes {stable_mosaic.version = 11 : i64} {
  func.func @_conv_bn_relu_pool_kernel(%arg0: i32, %arg1: memref<1x32x144xbf16, #tpu.memory_space<vmem>>, %arg2: memref<3x16x24xbf16, #tpu.memory_space<vmem>>, %arg3: memref<16x1xf32, #tpu.memory_space<vmem>>, %arg4: memref<1x8x128xf32, #tpu.memory_space<vmem>>) attributes {dimension_semantics = [#tpu.dimension_semantics<parallel>], iteration_bounds = array<i64: 2>, scalar_prefetch = 0 : i64, scratch_operands = 0 : i64, tpu.core_type = #tpu.core_type<tc>, window_params = [{transform_indices = @transform_0, window_bounds = array<i64: 1, 32, 144>}, {pipeline_mode = #tpu.pipeline_mode<synchronous>, transform_indices = @transform_1, window_bounds = array<i64: 3, 16, 24>}, {pipeline_mode = #tpu.pipeline_mode<synchronous>, transform_indices = @transform_2, window_bounds = array<i64: 16, 1>}, {transform_indices = @transform_3, window_bounds = array<i64: 1, 8, 128>}]} {
    %c0 = arith.constant 0 : index
    %c0_0 = arith.constant 0 : index
    %c0_1 = arith.constant 0 : index
    %0 = vector.load %arg1[%c0, %c0_0, %c0_1] : memref<1x32x144xbf16, #tpu.memory_space<vmem>>, vector<1x32x144xbf16>
    %1 = vector.shape_cast %0 : vector<1x32x144xbf16> to vector<32x144xbf16>
    %cst = arith.constant 0.000000e+00 : f32
    %2 = vector.broadcast %cst : f32 to vector<16x128xf32>
    %3 = vector.extract_strided_slice %1 {offsets = [0, 0], sizes = [24, 128], strides = [1, 1]} : vector<32x144xbf16> to vector<24x128xbf16>
    %c0_2 = arith.constant 0 : index
    %c0_3 = arith.constant 0 : index
    %c0_4 = arith.constant 0 : index
    %4 = vector.load %arg2[%c0_2, %c0_3, %c0_4] : memref<3x16x24xbf16, #tpu.memory_space<vmem>>, vector<1x16x24xbf16>
    %5 = vector.shape_cast %4 : vector<1x16x24xbf16> to vector<16x24xbf16>
    %cst_5 = arith.constant dense<0.000000e+00> : vector<16x128xf32>
    %6 = tpu.matmul %5, %3, %cst_5 {dimension_numbers = #tpu.dot_dimension_numbers<[1], [0], [0], [1], [0, 0, 1, 1], [], []>} : vector<16x24xbf16>, vector<24x128xbf16>, vector<16x128xf32> -> vector<16x128xf32>
    %7 = arith.addf %2, %6 : vector<16x128xf32>
    %8 = vector.extract_strided_slice %1 {offsets = [0, 8], sizes = [24, 128], strides = [1, 1]} : vector<32x144xbf16> to vector<24x128xbf16>
    %c1 = arith.constant 1 : index
    %c0_6 = arith.constant 0 : index
    %c0_7 = arith.constant 0 : index
    %9 = vector.load %arg2[%c1, %c0_6, %c0_7] : memref<3x16x24xbf16, #tpu.memory_space<vmem>>, vector<1x16x24xbf16>
    %10 = vector.shape_cast %9 : vector<1x16x24xbf16> to vector<16x24xbf16>
    %cst_8 = arith.constant dense<0.000000e+00> : vector<16x128xf32>
    %11 = tpu.matmul %10, %8, %cst_8 {dimension_numbers = #tpu.dot_dimension_numbers<[1], [0], [0], [1], [0, 0, 1, 1], [], []>} : vector<16x24xbf16>, vector<24x128xbf16>, vector<16x128xf32> -> vector<16x128xf32>
    %12 = arith.addf %7, %11 : vector<16x128xf32>
    %13 = vector.extract_strided_slice %1 {offsets = [0, 16], sizes = [24, 128], strides = [1, 1]} : vector<32x144xbf16> to vector<24x128xbf16>
    %c2 = arith.constant 2 : index
    %c0_9 = arith.constant 0 : index
    %c0_10 = arith.constant 0 : index
    %14 = vector.load %arg2[%c2, %c0_9, %c0_10] : memref<3x16x24xbf16, #tpu.memory_space<vmem>>, vector<1x16x24xbf16>
    %15 = vector.shape_cast %14 : vector<1x16x24xbf16> to vector<16x24xbf16>
    %cst_11 = arith.constant dense<0.000000e+00> : vector<16x128xf32>
    %16 = tpu.matmul %15, %13, %cst_11 {dimension_numbers = #tpu.dot_dimension_numbers<[1], [0], [0], [1], [0, 0, 1, 1], [], []>} : vector<16x24xbf16>, vector<24x128xbf16>, vector<16x128xf32> -> vector<16x128xf32>
    %17 = arith.addf %12, %16 : vector<16x128xf32>
    %cst_12 = arith.constant 0.000000e+00 : f32
    %18 = vector.broadcast %cst_12 : f32 to vector<16x128xf32>
    %19 = vector.extract_strided_slice %1 {offsets = [8, 0], sizes = [24, 128], strides = [1, 1]} : vector<32x144xbf16> to vector<24x128xbf16>
    %c0_13 = arith.constant 0 : index
    %c0_14 = arith.constant 0 : index
    %c0_15 = arith.constant 0 : index
    %20 = vector.load %arg2[%c0_13, %c0_14, %c0_15] : memref<3x16x24xbf16, #tpu.memory_space<vmem>>, vector<1x16x24xbf16>
    %21 = vector.shape_cast %20 : vector<1x16x24xbf16> to vector<16x24xbf16>
    %cst_16 = arith.constant dense<0.000000e+00> : vector<16x128xf32>
    %22 = tpu.matmul %21, %19, %cst_16 {dimension_numbers = #tpu.dot_dimension_numbers<[1], [0], [0], [1], [0, 0, 1, 1], [], []>} : vector<16x24xbf16>, vector<24x128xbf16>, vector<16x128xf32> -> vector<16x128xf32>
    %23 = arith.addf %18, %22 : vector<16x128xf32>
    %24 = vector.extract_strided_slice %1 {offsets = [8, 8], sizes = [24, 128], strides = [1, 1]} : vector<32x144xbf16> to vector<24x128xbf16>
    %c1_17 = arith.constant 1 : index
    %c0_18 = arith.constant 0 : index
    %c0_19 = arith.constant 0 : index
    %25 = vector.load %arg2[%c1_17, %c0_18, %c0_19] : memref<3x16x24xbf16, #tpu.memory_space<vmem>>, vector<1x16x24xbf16>
    %26 = vector.shape_cast %25 : vector<1x16x24xbf16> to vector<16x24xbf16>
    %cst_20 = arith.constant dense<0.000000e+00> : vector<16x128xf32>
    %27 = tpu.matmul %26, %24, %cst_20 {dimension_numbers = #tpu.dot_dimension_numbers<[1], [0], [0], [1], [0, 0, 1, 1], [], []>} : vector<16x24xbf16>, vector<24x128xbf16>, vector<16x128xf32> -> vector<16x128xf32>
    %28 = arith.addf %23, %27 : vector<16x128xf32>
    %29 = vector.extract_strided_slice %1 {offsets = [8, 16], sizes = [24, 128], strides = [1, 1]} : vector<32x144xbf16> to vector<24x128xbf16>
    %c2_21 = arith.constant 2 : index
    %c0_22 = arith.constant 0 : index
    %c0_23 = arith.constant 0 : index
    %30 = vector.load %arg2[%c2_21, %c0_22, %c0_23] : memref<3x16x24xbf16, #tpu.memory_space<vmem>>, vector<1x16x24xbf16>
    %31 = vector.shape_cast %30 : vector<1x16x24xbf16> to vector<16x24xbf16>
    %cst_24 = arith.constant dense<0.000000e+00> : vector<16x128xf32>
    %32 = tpu.matmul %31, %29, %cst_24 {dimension_numbers = #tpu.dot_dimension_numbers<[1], [0], [0], [1], [0, 0, 1, 1], [], []>} : vector<16x24xbf16>, vector<24x128xbf16>, vector<16x128xf32> -> vector<16x128xf32>
    %33 = arith.addf %28, %32 : vector<16x128xf32>
    %34 = arith.maximumf %17, %33 : vector<16x128xf32>
    %c0_25 = arith.constant 0 : index
    %c0_26 = arith.constant 0 : index
    %35 = vector.load %arg3[%c0_25, %c0_26] : memref<16x1xf32, #tpu.memory_space<vmem>>, vector<16x1xf32>
    %36 = vector.broadcast %35 : vector<16x1xf32> to vector<16x128xf32>
    %37 = arith.addf %34, %36 : vector<16x128xf32>
    %cst_27 = arith.constant 0.000000e+00 : f32
    %38 = vector.broadcast %cst_27 : f32 to vector<16x128xf32>
    %39 = arith.maximumf %37, %38 : vector<16x128xf32>
    %40 = vector.extract_strided_slice %39 {offsets = [0, 0], sizes = [8, 128], strides = [1, 1]} : vector<16x128xf32> to vector<8x128xf32>
    %c0_28 = arith.constant 0 : index
    %c0_29 = arith.constant 0 : index
    %c0_30 = arith.constant 0 : index
    %41 = vector.load %arg4[%c0_28, %c0_29, %c0_30] : memref<1x8x128xf32, #tpu.memory_space<vmem>>, vector<1x8x128xf32>
    %42 = vector.shape_cast %41 : vector<1x8x128xf32> to vector<8x128xf32>
    %43 = vector.shape_cast %40 : vector<8x128xf32> to vector<1x8x128xf32>
    tpu.vector_store %arg4[%c0_28, %c0_29, %c0_30], %43 {strides = array<i32>} : memref<1x8x128xf32, #tpu.memory_space<vmem>>, vector<1x8x128xf32>,
    return
  }
  func.func @transform_0(%arg0: i32) -> (i32, i32, i32) {
    %c0_i32 = arith.constant 0 : i32
    %c0_i32_0 = arith.constant 0 : i32
    %c0_i32_1 = arith.constant 0 : i32
    return %arg0, %c0_i32, %c0_i32_0 : i32, i32, i32
  }
  func.func @transform_1(%arg0: i32) -> (i32, i32, i32) {
    %c0_i32 = arith.constant 0 : i32
    %c0_i32_0 = arith.constant 0 : i32
    %c0_i32_1 = arith.constant 0 : i32
    %c0_i32_2 = arith.constant 0 : i32
    return %c0_i32, %c0_i32_0, %c0_i32_1 : i32, i32, i32
  }
  func.func @transform_2(%arg0: i32) -> (i32, i32) {
    %c0_i32 = arith.constant 0 : i32
    %c0_i32_0 = arith.constant 0 : i32
    %c0_i32_1 = arith.constant 0 : i32
    return %c0_i32, %c0_i32_0 : i32, i32
  }
  func.func @transform_3(%arg0: i32) -> (i32, i32, i32) {
    %c0_i32 = arith.constant 0 : i32
    %c0_i32_0 = arith.constant 0 : i32
    %c0_i32_1 = arith.constant 0 : i32
    return %arg0, %c0_i32, %c0_i32_0 : i32, i32, i32
  }
}

</mosaic_0001>

<bundles_post_ra>
// kernel: tpu_custom_call.1
= control target key start
LH: loop header
LB: loop body
LE: loop exit
PB: predicated region body
PF: predicated region fallthrough
CT: control target
= control target key end

     0   :  { %8 = vsyncpa [#allocation3], 0  ;;  %s1223_s0 = inlined_call_operand.hbm [shape: bf16[2,32,144], index: 0, kind: input, shape index: {}]   ;;  %s1224_s1 = inlined_call_operand.hbm [shape: bf16[3,16,24], index: 1, kind: input, shape index: {}]   ;;  %s1225_s2 = inlined_call_operand.vmem [shape: f32[16,1], index: 2, kind: input, shape index: {}]   ;;  %s1226_s3 = inlined_call_operand.hbm [shape: f32[2,8,128], index: 3, kind: output, shape index: {}]  }
   0x1   :  { %10 = vsyncpa [#allocation3 + $0x1], 0 }
   0x2   :  { %11 = vsyncpa [#allocation6], 0 }
   0x3   :  { %12 = vsyncpa [#allocation4], 0 }
   0x4   :  { %14 = vsyncpa [#allocation4 + $0x1], 0  ;;  %s1008_s12 = smov 0   ;;  %s1010_s13 = smov 0  }
   0x5   :  { %s1012_s14 = smov 0   ;;  %s1014_s15 = smov 0  }
   0x6 LB: > { %s1029_s16 = sadd.s32 4294967295, %s974_s15   ;;  %s675_s17 = sadd.s32 4294967294, %s974_s15   ;;  %s974_s15 = sphi %s1014_s15, %s1248_s15   ;;  %s970_s14 = sphi %s1012_s14, %s1247_s14   ;;  %s966_s13 = sphi %s1010_s13, %s1246_s13   ;;  %s962_s12 = sphi %s1008_s12, %s1245_s12  }
   0x7   : > { %p40_p0 = scmp.ne.s32.totalorder %s966_s13, %s962_s12  ;;  %p1227_p1 = scmp.eq.s32.totalorder %s1029_s16, 0 }
   0x8   : > { %p112_p3 = scmp.eq.s32.totalorder %s675_s17, 1  ;;  %p676_p5 = scmp.ge.s32.totalorder %s974_s15, 1 }
   0x9   : > { %p1038_p4 = por %p1227_p1, %p40_p0  ;;  %p119_p7 = scmp.lt.s32.totalorder %s974_s15, 3 }
   0xa   : > { %p1043_p6 = por %p112_p3, %p40_p0  ;;  %s976_s21 = smov [#allocation5]  }
   0xb   : > { %s1231_s18 = scalar_select %p1038_p4, 1, 0 }
   0xc   : > { %s1232_s19 = scalar_select %p1043_p6, 1, 0 }
   0xd   : > { %p1048_p8 = pnand %p676_p5, %p119_p7  ;;  %s131_s22 = sshll.u32 %s976_s21, 4  ;;  %s132_s22 = int_to_ptr.vmem [resolvable:$true] %s131_s22 }
   0xe   : > { %s1062_s24 = sadd.s32 1, %s974_s15   ;;  %s27_s25 = sadd.s32 1, %s970_s14 }
   0xf   : > { %s1233_s20 = scalar_select %p1048_p8, 1, 0 }
  0x10   : > { %p782_p9 = pneg %p1048_p8  ;;  %s24_s26 = ssub.s32 %s974_s15, %s1062_s24 }
  0x11   : > { %s863_s27 = scalar_lea.vmem %s132_s22, 384  ;;  %p871_p5 = scmp.lt.s32.totalorder %s132_s22, %s132_s22 }
  0x12   : > { %p1057_p11 = pnand %p782_p9, %p1227_p1  ;;  %p864_p13 = scmp.ne.s32.totalorder %s132_s22, %s863_s27 }
  0x13   : > { %p872_p7 = scmp.lt.s32.totalorder %s863_s27, %s863_s27 }
  0x14   : > { %p854_p12 = pneg %p1057_p11 }
  0x15   : > { %p873_p10 = por %p872_p7, %p871_p5 }
  0x16   : > { %p866_p0 = pnand %p864_p13, %p854_p12 }
  0x18   : > { %p867_p3 = pneg %p866_p0 }
  0x1a   : > { %p874_p2 = pnand %p873_p10, %p867_p3 }
  0x1c   : > { %877 = shalt.err (!%p874_p2)
}
  0x1d   : > { %s977_s28 = smov 64   ;;  %s978_s29 = smov 4  }
  0x1e   : > { %785 = dma.hbm_to_vmem [thread:$0]  (!%p1057_p11), %s1224_s1, 384, %s132_s22, [#allocation6], %s977_s28, %s977_s28, %s978_s29  }
  0x1f   : > { %p25_p9 = scmp.eq.s32.totalorder %s24_s26, 0  ;;  %p34_p12 = scmp.ne.s32.totalorder %s970_s14, %s966_s13 }
  0x20   : > { %p35_p10 = scmp.eq.s32.totalorder %s974_s15, 0  ;;  %p795_p2 = scmp.lt.s32.totalorder %s974_s15, 2 }
  0x21   : > { %s1079_s5 = scalar_select %p25_p9, %s970_s14, %s27_s25  }
  0x22   : > { %p36_p13 = por %p35_p10, %p34_p12  ;;  %p1235_p0 = scmp.eq.s32.totalorder %s1029_s16, 1 }
  0x23   : > { %s148_s7 = sand.u32 1, %s970_s14   ;;  %s707_s8 = sshll.u32 %s974_s15, 9 }
  0x24   : > { %p1083_p3 = por %p1235_p0, %p34_p12  ;;  %s679_s9 = sshll.u32 %s148_s7, 5 }
  0x25   : > { %s1092_s17 = scalar_lea.hbm %s1223_s0, %s707_s8  ;;  %s152_s21 = scalar_lea.vmem [#allocation2], %s679_s9 }
  0x26   : > { %s1236_s6 = scalar_select %p1083_p3, 1, 0 }
  0x27   : > { %s159_s22 = sshll.u32 %s152_s21, 4  ;;  %p1094_p11 = pnand %p795_p2, %p36_p13  ;;  %s1098_s22 = int_to_ptr.vmem [resolvable:$true] %s159_s22 }
  0x28   : > { %s1100_s25 = scalar_lea.sflag [#allocation3], %s148_s7  ;;  %s878_s26 = scalar_lea.hbm %s1092_s17, 512 }
  0x29   : > { %p879_p5 = scmp.ne.s32.totalorder %s1092_s17, %s878_s26  ;;  %p880_p7 = pneg %p1094_p11 }
  0x2a   : > { %s883_s29 = scalar_lea.hbm %s1223_s0, 1024  ;;  %p884_p10 = scmp.lt.s32.totalorder %s1092_s17, %s1223_s0 }
  0x2b   : > { %p881_p9 = pnand %p880_p7, %p879_p5  ;;  %p885_p2 = scmp.lt.s32.totalorder %s883_s29, %s878_s26 }
  0x2d   : > { %p882_p12 = pneg %p881_p9  ;;  %p886_p13 = por %p885_p2, %p884_p10 }
  0x2f   : > { %p887_p0 = pnand %p886_p13, %p882_p12 }
  0x31   : > { %890 = shalt.err (!%p887_p0)
}
  0x32   : > { %s891_s7 = scalar_lea.vmem %s1098_s22, 512  ;;  %s979_s8 = smov [#allocation2]  }
  0x33   : > { %p892_p1 = scmp.ne.s32.totalorder %s1098_s22, %s891_s7  ;;  %s896_s9 = sshll.u32 %s979_s8, 4  ;;  %s897_s9 = int_to_ptr.vmem [resolvable:$false] %s896_s9 }
  0x34   : > { %s898_s10 = scalar_lea.vmem %s897_s9, 1024  ;;  %p899_p9 = scmp.lt.s32.totalorder %s1098_s22, %s897_s9 }
  0x35   : > { %p894_p6 = pnand %p892_p1, %p880_p7  ;;  %p900_p3 = scmp.lt.s32.totalorder %s898_s10, %s891_s7 }
  0x37   : > { %p895_p5 = pneg %p894_p6  ;;  %p901_p4 = por %p900_p3, %p899_p9 }
  0x39   : > { %p902_p8 = pnand %p901_p4, %p895_p5 }
  0x3b   : > { %905 = shalt.err (!%p902_p8)
}
  0x3c   : > { %s980_s11 = smov 128   ;;  %s981_s21 = smov 8  }
  0x3d   : > { %789 = dma.hbm_to_vmem [thread:$0]  (!%p1094_p11), %s1092_s17, 512, %s1098_s22, %s1100_s25, %s980_s11, %s980_s11, %s981_s21  }
  0x3e   : > { %p1238_p1 = scmp.ne.s32.totalorder %s1233_s20, 0 }
  0x3f   : > { %s1124_s26 = sand.u32 (!%p1238_p1), 1, %s966_s13   ;;  %p1239_p4 = scmp.ne.s32.totalorder (!%p1238_p1), %s1231_s18, 0 }
  0x40   : > { %171 = sbr.rel (%p1238_p1) target bundleno = 438 (0x1b6), region = 32  ;;  %s683_s27 = sshll.u32 (!%p1238_p1), %s1124_s26, 5 }
  0x41   : > { %s174_s28 = scalar_lea.sflag (!%p1238_p1), [#allocation3], %s1124_s26  ;;  %s177_s29 = scalar_lea.vmem (!%p1238_p1), [#allocation2], %s683_s27 }
  0x45   : > { %949 = dma.done.wait (%p1239_p4), %s174_s28, 512  }
  0x46   : > { %951 = vsyncadd (%p1239_p4), %s174_s28, 4294966784  ;;  %p1240_p6 = scmp.eq.s32.totalorder %s1029_s16, 0 }
  0x48   : > { %953 = dma.done.wait (%p1240_p6), [#allocation6], 384   ;;  %p1241_p8 = pmov %p1240_p6 }
  0x49   : > { %v982_v0 = vmov 0.0   ;;  %v207_v1 = vld [vmem:[%s177_s29 + $0x10] sm:$0xff]  ;;  %v205_v2 = vld [vmem:[%s177_s29] sm:$0xff]  ;;  %v206_v3 = vld [vmem:[%s177_s29 + $0x8] sm:$0xff]  ;;  %vm248_vm0 = vcmask 1043456   ;;  %vm983_vm1 = vmmov 0  }
  0x4a   : > { %955 = vsyncadd (%p1241_p8), [#allocation6], 4294966912  ;;  %734 = vmatprep.subr.bf16.mxu1 %v982_v0  ;;  %726 = vmatprep.subr.bf16.mxu0 %v982_v0  ;;  %v689_v4 = vcombine.low %v207_v1, %v207_v1  ;;  %v687_v5 = vcombine.low %v205_v2, %v206_v3  ;;  %s984_s18 = smov 120   ;;  %v690_v6 = vcombine.high %v207_v1, %v207_v1  ;;  %v208_v9 = vld [vmem:[%s177_s29 + $0x18] sm:$0xff]  ;;  %v1144_v10 = vld [vmem:[#allocation5] sm:$0xff]   ;;  %vm244_vm2 = vcmask 195584  }
  0x4b   : > { %738 = vmatprep.mubr.msk.bf16.mxu1 %vm983_vm1, %v982_v0  ;;  %730 = vmatprep.mubr.msk.bf16.mxu0 %vm983_vm1, %v982_v0  ;;  %v688_v7 = vcombine.high %v205_v2, %v206_v3  ;;  %s985_s20 = smov 112   ;;  %v698_v11 = vcombine.low %v208_v9, %v208_v9  ;;  %v699_v12 = vcombine.high %v208_v9, %v208_v9  ;;  %v986_v15 = vmov 0   ;;  %v572_v16 = vld [vmem:[%s1225_s2] sm:$0xff]  ;;  %v850_v26 = vld [vmem:[#allocation5 + $0x8] sm:$0xff]   ;;  %v851_v36 = vld [vmem:[#allocation5 + $0x10] sm:$0xff]   ;;  %s685_s23 = sshll.u32 %s1124_s26, 3 }
  0x4c   : > { %236 = vrot.lane.b32.xlu0 %v689_v4, %s984_s18  ;;  %232 = vrot.lane.b32.xlu1 %v687_v5, %s984_s18  ;;  %v302_v8 = vsel %vm248_vm0, %v689_v4, 0  ;;  %v696_v13 = vcombine.low %v206_v3, %v207_v1  ;;  %v697_v14 = vcombine.high %v206_v3, %v207_v1  ;;  %vm240_vm3 = vcmask 982016   ;;  %s704_s25 = sshll.u32 %s1029_s16, 7  ;;  %s203_s30 = scalar_lea.vmem [#allocation7], %s685_s23 }
  0x4d   : > { %735 = vmatpush3.bf16.msra.mxu1 %v302_v8  ;;  %840 = vset.pattern.permute.xlu0 %v986_v15  ;;  %vm360_vm4 = vcmask 916480   ;;  %v474_v39 = vsel %vm248_vm0, %v698_v11, 0  ;;  %s595_s4 = sshll.u32 %s203_s30, 4  ;;  %s593_s9 = scalar_lea.hbm %s1226_s3, %s704_s25  ;;  %s596_s4 = int_to_ptr.vmem [resolvable:$true] %s595_s4 }
  0x4e   : > { %736 = vmatprep.subr.bf16.mxu1 %v982_v0  ;;  %s582_s10 = scalar_lea.sflag [#allocation4], %s1124_s26  ;;  %s906_s11 = scalar_lea.vmem %s596_s4, 128 }
  0x4f   : > { %p907_p3 = scmp.ne.s32.totalorder %s596_s4, %s906_s11  ;;  %p1242_p11 = scmp.ne.s32.totalorder %s1236_s6, 0 }
  0x50   : > { %238 = vrot.lane.b32.xlu0 %v690_v6, %s984_s18  ;;  %234 = vrot.lane.b32.xlu1 %v688_v7, %s984_s18  ;;  %s987_s21 = smov [#allocation7]  }
  0x51   : > { %737 = vmatpush3.bf16.msra.mxu1 %v687_v5  ;;  %p908_p7 = pnand %p907_p3, %p1242_p11  ;;  %s910_s27 = sshll.u32 %s987_s21, 4  ;;  %s911_s27 = int_to_ptr.vmem [resolvable:$false] %s910_s27 }
  0x52   : > { %750 = vmatprep.subr.bf16.mxu1 %v982_v0  ;;  %s912_s16 = scalar_lea.vmem %s911_s27, 256  ;;  %p913_p10 = scmp.lt.s32.totalorder %s596_s4, %s911_s27 }
  0x53   : > { %p909_p12 = pneg %p908_p7  ;;  %p914_p2 = scmp.lt.s32.totalorder %s912_s16, %s906_s11 }
  0x54   : > { %356 = vrot.lane.b32.xlu0 %v689_v4, %s985_s20  ;;  %358 = vrot.lane.b32.xlu1 %v690_v6, %s985_s20 }
  0x55   : > { %739 = vmatmul.mubr.msk.bf16.vlgmr.msra.gmra.mxu1 %vm244_vm2, %v1144_v10  ;;  %p915_p13 = por %p914_p2, %p913_p10 }
  0x56   : > { %754 = vmatprep.mubr.msk.bf16.mxu1 %vm983_vm1, %v982_v0 }
  0x57   : > { %p916_p0 = pnand %p915_p13, %p909_p12 }
  0x58   : > { %422 = vrot.lane.b32.xlu0 %v698_v11, %s984_s18  ;;  %424 = vrot.lane.b32.xlu1 %v699_v12, %s984_s18 }
  0x5c   : > { %352 = vrot.lane.b32.xlu0 %v687_v5, %s985_s20  ;;  %354 = vrot.lane.b32.xlu1 %v688_v7, %s985_s20 }
  0x60   : > { %418 = vrot.lane.b32.xlu0 %v696_v13, %s984_s18  ;;  %420 = vrot.lane.b32.xlu1 %v697_v14, %s984_s18 }
  0x64   : > { %520 = vrot.lane.b32.xlu0 %v698_v11, %s985_s20  ;;  %522 = vrot.lane.b32.xlu1 %v699_v12, %s985_s20 }
  0x68   : > { %516 = vrot.lane.b32.xlu0 %v696_v13, %s985_s20  ;;  %518 = vrot.lane.b32.xlu1 %v697_v14, %s985_s20 }
  0x6c   : > { %575 = vperm.xlu0 %840, %v572_v16  }
  0xbe   : > { %v237_v17 = vpop.permute.xlu0 %236  ;;  %v233_v18 = vpop.permute.xlu1 %232 }
  0xc2   : > { %v239_v19 = vpop.permute.xlu0 %238  ;;  %v235_v20 = vpop.permute.xlu1 %234 }
  0xc3   : > { %v242_v21 = vsel %vm240_vm3, %v237_v17, %v239_v19  ;;  %v241_v25 = vsel %vm240_vm3, %v233_v18, %v235_v20 }
  0xc4   : > { %v250_v22 = vsel %vm248_vm0, %v242_v21, 0 }
  0xc5   : > { %727 = vmatpush3.bf16.msra.mxu0 %v250_v22 }
  0xc6   : > { %v357_v23 = vpop.permute.xlu0 %356  ;;  %v359_v24 = vpop.permute.xlu1 %358  ;;  %728 = vmatprep.subr.bf16.mxu0 %v982_v0 }
  0xc7   : > { %v362_v27 = vsel %vm360_vm4, %v357_v23, %v359_v24 }
  0xc8   : > { %v368_v31 = vsel %vm248_vm0, %v362_v27, 0 }
  0xc9   : > { %729 = vmatpush3.bf16.msra.mxu0 %v241_v25 }
  0xca   : > { %v423_v28 = vpop.permute.xlu0 %422  ;;  %v425_v29 = vpop.permute.xlu1 %424  ;;  %742 = vmatprep.subr.bf16.mxu0 %v982_v0 }
  0xcb   : > { %v427_v30 = vsel %vm240_vm3, %v423_v28, %v425_v29 }
  0xcc   : > { %v430_v32 = vsel %vm248_vm0, %v427_v30, 0  ;;  %731 = vmatmul.mubr.msk.bf16.vlgmr.msra.gmra.mxu0 %vm244_vm2, %v850_v26 }
  0xcd   : > { %743 = vmatpush3.bf16.msra.mxu0 %v368_v31  ;;  %751 = vmatpush3.bf16.msra.mxu1 %v430_v32 }
  0xce   : > { %v353_v33 = vpop.permute.xlu0 %352  ;;  %v355_v34 = vpop.permute.xlu1 %354  ;;  %744 = vmatprep.subr.bf16.mxu0 %v982_v0  ;;  %746 = vmatprep.mubr.msk.bf16.mxu0 %vm983_vm1, %v982_v0 }
  0xcf   : > { %v361_v35 = vsel %vm360_vm4, %v353_v33, %v355_v34  ;;  %752 = vmatprep.subr.bf16.mxu1 %v982_v0 }
  0xd1   : > { %745 = vmatpush3.bf16.msra.mxu0 %v361_v35 }
  0xd2   : > { %v419_v37 = vpop.permute.xlu0 %418  ;;  %v421_v38 = vpop.permute.xlu1 %420  ;;  %758 = vmatprep.subr.bf16.mxu0 %v982_v0 }
  0xd3   : > { %v426_v40 = vsel %vm240_vm3, %v419_v37, %v421_v38 }
  0xd4   : > { %747 = vmatmul.mubr.msk.bf16.vlgmr.msra.gmra.mxu0 %vm244_vm2, %v851_v36  ;;  %753 = vmatpush3.bf16.msra.mxu1 %v426_v40 }
  0xd5   : > { %759 = vmatpush3.bf16.msra.mxu0 %v474_v39  ;;  %766 = vmatprep.subr.bf16.mxu1 %v982_v0 }
  0xd6   : > { %v521_v41 = vpop.permute.xlu0 %520  ;;  %v523_v42 = vpop.permute.xlu1 %522  ;;  %760 = vmatprep.subr.bf16.mxu0 %v982_v0  ;;  %762 = vmatprep.mubr.msk.bf16.mxu0 %vm983_vm1, %v982_v0 }
  0xd7   : > { %v525_v43 = vsel %vm360_vm4, %v521_v41, %v523_v42  ;;  %755 = vmatmul.mubr.msk.bf16.vlgmr.msra.gmra.mxu1 %vm244_vm2, %v850_v26 }
  0xd8   : > { %v528_v44 = vsel %vm248_vm0, %v525_v43, 0  ;;  %770 = vmatprep.mubr.msk.bf16.mxu1 %vm983_vm1, %v982_v0 }
  0xd9   : > { %761 = vmatpush3.bf16.msra.mxu0 %v696_v13  ;;  %767 = vmatpush3.bf16.msra.mxu1 %v528_v44 }
  0xda   : > { %v517_v45 = vpop.permute.xlu0 %516  ;;  %v519_v46 = vpop.permute.xlu1 %518  ;;  %768 = vmatprep.subr.bf16.mxu1 %v982_v0 }
  0xdb   : > { %v524_v47 = vsel %vm360_vm4, %v517_v45, %v519_v46 }
  0xdc   : > { %763 = vmatmul.mubr.msk.bf16.vlgmr.msra.gmra.mxu0 %vm244_vm2, %v1144_v10 }
  0xdd   : > { %769 = vmatpush3.bf16.msra.mxu1 %v524_v47 }
  0xe0   : > { %771 = vmatmul.mubr.msk.bf16.vlgmr.msra.gmra.mxu1 %vm244_vm2, %v851_v36 }
  0xe7   : > { %v576_v8 = vpop.permute.xlu0 %575 }
 0x115   : > { %v338_v48 = vpop.f32.mrf.mxu1 }
 0x117   : > { %v740_v49 = vpop.f32.mrf.mxu1 }
 0x119   : > { %v341_v50 = vpop.f32.mrf.mxu1 }
 0x11b   : > { %v741_v51 = vpop.f32.mrf.mxu1 }
 0x18c   : > { %v286_v52 = vpop.f32.mrf.mxu0 }
 0x18d   : > { %v339_v2 = vadd.f32 %v338_v48, %v286_v52 }
 0x18e   : > { %v732_v53 = vpop.f32.mrf.mxu0 }
 0x190   : > { %v289_v54 = vpop.f32.mrf.mxu0 }
 0x192   : > { %v733_v55 = vpop.f32.mrf.mxu0 }
 0x194   : > { %v404_v56 = vpop.f32.mrf.mxu0 }
 0x195   : > { %v410_v6 = vadd.f32 %v404_v56, %v339_v2 }
 0x196   : > { %v748_v57 = vpop.f32.mrf.mxu0 }
 0x197   : > { %v466_v58 = vpop.f32.mrf.mxu1 }
 0x198   : > { %v407_v59 = vpop.f32.mrf.mxu0 }
 0x199   : > { %v756_v60 = vpop.f32.mrf.mxu1 }
 0x19a   : > { %v749_v61 = vpop.f32.mrf.mxu0 }
 0x19b   : > { %v469_v62 = vpop.f32.mrf.mxu1 }
 0x19c   : > { %v510_v63 = vpop.f32.mrf.mxu0 }
 0x19d   : > { %v757_v0 = vpop.f32.mrf.mxu1  ;;  %v511_v3 = vadd.f32 %v510_v63, %v466_v58 }
 0x19e   : > { %v764_v1 = vpop.f32.mrf.mxu0 }
 0x1a0   : > { %v513_v4 = vpop.f32.mrf.mxu0  ;;  %v564_v5 = vpop.f32.mrf.mxu1 }
 0x1a1   : > { %v570_v7 = vadd.f32 %v564_v5, %v511_v3 }
 0x1a2   : > { %v765_v9 = vpop.f32.mrf.mxu0  ;;  %v772_v10 = vpop.f32.mrf.mxu1 }
 0x1a3   : > { %v571_v11 = vmax.f32 %v410_v6, %v570_v7 }
 0x1a4   : > { %v567_v12 = vpop.f32.mrf.mxu1 }
 0x1a5   : > { %v578_v13 = vadd.f32 %v576_v8, %v571_v11 }
 0x1a6   : > { %v773_v14 = vpop.f32.mrf.mxu1 }
 0x1a7   : > { %v579_v15 = vmax.f32 %v578_v13, 0.0 }
 0x1a9   : > { %580 = vst [vmem:[%s203_s30] sm:$0xff] %v579_v15 }
 0x1aa   : > { %919 = shalt.err (!%p916_p0)
}
 0x1ab   : > { %s920_s28 = scalar_lea.hbm %s593_s9, 128  ;;  %s924_s18 = scalar_lea.hbm %s1226_s3, 256 }
 0x1ac   : > { %p921_p5 = scmp.ne.s32.totalorder %s593_s9, %s920_s28  ;;  %p925_p4 = scmp.lt.s32.totalorder %s593_s9, %s1226_s3 }
 0x1ad   : > { %p926_p6 = scmp.lt.s32.totalorder %s924_s18, %s920_s28 }
 0x1ae   : > { %p922_p9 = pnand %p921_p5, %p1242_p11 }
 0x1af   : > { %p927_p8 = por %p926_p6, %p925_p4 }
 0x1b0   : > { %p923_p1 = pneg %p922_p9 }
 0x1b2   : > { %p928_p3 = pnand %p927_p8, %p923_p1 }
 0x1b4   : > { %931 = shalt.err (!%p928_p3)
}
 0x1b5   : > { %780 = dma.vmem_to_hbm [thread:$0]  (%p1242_p11), %s596_s4, 128, %s593_s9, %s582_s10  }
 0x1b6 PF: > { %s607_s22 = sand.u32 1, %s962_s12   ;;  %p1243_p7 = scmp.ne.s32.totalorder %s1232_s19, 0 }
 0x1b7   : > { %p1244_p12 = scmp.ge.s32.totalorder %s974_s15, 2  ;;  %s608_s23 = scalar_lea.sflag [#allocation4], %s607_s22 }
 0x1b9   : > { %p791_p10 = pnand %p1244_p12, %p1243_p7 }
 0x1bb   : > { %p792_p2 = pneg %p791_p10 }
 0x1bd   : > { %957 = dma.done.wait (%p792_p2), %s608_s23, 128  }
 0x1be   : > { %959 = vsyncadd (%p792_p2), %s608_s23, 4294967168  ;;  %p17_p13 = scmp.ge.s32.totalorder %s1062_s24, 4   ;;  %s1245_s12 = smov %s966_s13 }
 0x1bf   : > { %s1246_s13 = smov %s970_s14  ;;  %s1247_s14 = smov %s1079_s5 }
 0x1c0   : > { %s1248_s15 = smov %s1062_s24  ;;  %19 = sbr.rel (!%p17_p13) target bundleno = 6 (0x6), region = 83 }
 0x1c5   :  { %613 = vsyncpa [#allocation3], 1 }
 0x1c6   :  { %615 = vsyncpa [#allocation3 + $0x1], 1 }
 0x1c7   :  { %616 = vsyncpa [#allocation6], 1 }
 0x1c8   :  { %617 = vsyncpa [#allocation4], 1 }
 0x1c9   :  { %619 = vsyncpa [#allocation4 + $0x1], 1 }

</bundles_post_ra>
